<compile_context>
chip_gen: v5e
topology: v5e:2x2
jax: 0.10.0
libtpu: 0.0.40
codegen_flags: <defaults>
</compile_context>

<pallas_src>
import functools

import jax
import jax.numpy as jnp
from jax.experimental import pallas as pl
from jax.experimental.pallas import tpu as pltpu


# ----------------------------- Pallas kernel -------------------------------

def _residual_block_kernel(x_ref, w1_ref, w2_ref, o_ref, *, C, H, W, N):
    """Fused ResidualBlock forward for the whole batch.

    x_ref : (C, N*H*W)  activations; channels on sublanes, batch*space on lanes
    w?_ref: (C, 9*C+1)  weight matrix; column (ky*3+kx)*C + c_in = w[:, c_in, ky, kx],
                        last column = bias (matched by a ones-row tap)
    o_ref : (C, N*H*W)
    """
    HW = H * W
    L = N * HW
    x = x_ref[...].astype(jnp.float32)                      # (C, L)

    # Static per-image spatial coordinate of every lane (built once, shared by both convs).
    lane = jax.lax.broadcasted_iota(jnp.int32, (C, L), 1)
    if HW & (HW - 1) == 0:                                  # power-of-two fast paths (HW=256, W=16)
        img = lane & (HW - 1)
    else:
        img = lane % HW
    if W & (W - 1) == 0:
        yy = img >> (W.bit_length() - 1)
        xx = img & (W - 1)
    else:
        # TODO(synk): non-power-of-two W falls back to vector integer div/mod.
        yy = img // W
        xx = img - yy * W

    ones_row = jnp.ones((1, L), jnp.float32)                # bias tap, hoisted (shared by both convs)

    def conv3x3(inp, w_ref_, dilation):
        """'Same' 3x3 dilated conv as a tap-stacked MXU matmul on a (C, N*HW) activation."""
        d = dilation
        # Hoisted boundary masks (also kill cross-image wrap from lane rolls, since yy/xx are mod HW).
        row_ok = {-d: yy >= d, 0: None, d: yy < H - d}
        col_ok = {-d: xx >= d, 0: None, d: xx < W - d}
        taps = []
        for ky in range(3):
            dy = (ky - 1) * d
            for kx in range(3):
                dx = (kx - 1) * d
                s = dy * W + dx                             # flat source offset of this tap
                # t[l] == inp[l + s] where the source lane is valid (masked otherwise).
                t = inp if s == 0 else pltpu.roll(inp, (-s) % L, axis=1)
                m = None
                for cond in (row_ok[dy], col_ok[dx]):
                    if cond is not None:
                        m = cond if m is None else (m & cond)
                if m is not None:
                    t = jnp.where(m, t, 0.0)
                taps.append(t)                              # (C, L)
        taps.append(ones_row)                               # ones tap -> bias column of the weight matrix
        tap_mat = jnp.concatenate(taps, axis=0)             # (9*C + 1, L)
        w = w_ref_[...].astype(jnp.float32)                 # (C, 9*C + 1)
        return jnp.dot(w, tap_mat, preferred_element_type=jnp.float32)   # MXU; (C, L)

    h = jnp.maximum(conv3x3(x, w1_ref, 1), 0.0)             # conv1 + bias + ReLU (stays in vregs)
    y = conv3x3(h, w2_ref, 2) + x                           # conv2 + bias + residual (pre-conv1 identity)
    o_ref[...] = jnp.maximum(y, 0.0).astype(o_ref.dtype)    # lane-dense (L multiple of 128) store


# ------------------------------- Wrapper ------------------------------------

def residual_block_forward(x_nchw, params):
    """Forward pass of ResidualBlock. Input/output are NCHW (PyTorch convention)."""
    N, C, H, W = x_nchw.shape
    HW = H * W
    L = N * HW

    # (N, C, H, W) -> (C, N*H*W): channels on sublanes, batch*space on lanes (lane-dense).
    x_cl = jnp.transpose(x_nchw.reshape(N, C, HW), (1, 0, 2)).reshape(C, L)

    def to_mat(w_oihw, b):
        # OIHW -> (C_out, kh, kw, C_in) -> (C_out, 9*C_in); append bias as the last column.
        wm = jnp.transpose(w_oihw, (0, 2, 3, 1)).reshape(C, 9 * C)
        return jnp.concatenate([wm, b.reshape(C, 1)], axis=1)          # (C, 9*C + 1)

    w1m = to_mat(params["w1"], params["b1"])
    w2m = to_mat(params["w2"], params["b2"])

    out_cl = pl.pallas_call(
        functools.partial(_residual_block_kernel, C=C, H=H, W=W, N=N),
        out_shape=jax.ShapeDtypeStruct((C, L), x_nchw.dtype),
        grid=(1,),                                   # single step: whole batch in one block
        in_specs=[
            pl.BlockSpec((C, L), lambda i: (0, 0)),
            pl.BlockSpec((C, 9 * C + 1), lambda i: (0, 0)),
            pl.BlockSpec((C, 9 * C + 1), lambda i: (0, 0)),
        ],
        out_specs=pl.BlockSpec((C, L), lambda i: (0, 0)),
    )(x_cl, w1m, w2m)

    return jnp.transpose(out_cl.reshape(C, N, HW), (1, 0, 2)).reshape(N, C, H, W)


# --------------------------- Reference (plain JAX) ---------------------------

def _ref_forward(x_nchw, params):
    def conv(v, w_oihw, b, dilation):
        out = jax.lax.conv_general_dilated(
            v, w_oihw,
            window_strides=(1, 1),
            padding=((dilation, dilation), (dilation, dilation)),
            rhs_dilation=(dilation, dilation),
            dimension_numbers=("NCHW", "OIHW", "NCHW"),
        )
        return out + b.reshape(1, -1, 1, 1)

    out = jax.nn.relu(conv(x_nchw, params["w1"], params["b1"], 1))
    out = conv(out, params["w2"], params["b2"], 2)
    return jax.nn.relu(out + x_nchw)


# ----------------------------------- Main ------------------------------------

def _init_params(key, channels):
    # PyTorch Conv2d default-ish init: U(-bound, bound), bound = 1/sqrt(fan_in), fan_in = C*3*3.
    k1, k2, k3, k4 = jax.random.split(key, 4)
    fan_in = channels * 9
    bound = 1.0 / (fan_in ** 0.5)
    shape_w = (channels, channels, 3, 3)             # PyTorch OIHW: (C_out, C_in, kh, kw)
    return {
        "w1": jax.random.uniform(k1, shape_w, jnp.float32, -bound, bound),
        "b1": jax.random.uniform(k2, (channels,), jnp.float32, -bound, bound),
        "w2": jax.random.uniform(k3, shape_w, jnp.float32, -bound, bound),
        "b2": jax.random.uniform(k4, (channels,), jnp.float32, -bound, bound),
    }


if __name__ == "__main__":
    key = jax.random.PRNGKey(0)
    k_x, k_p = jax.random.split(key)

    N, C, H, W = 2, 4, 16, 16
    x = jax.random.normal(k_x, (N, C, H, W), jnp.float32)
    params = _init_params(k_p, C)

    out = jax.block_until_ready(residual_block_forward(x, params))

    ref = _ref_forward(x, params)
    assert out.shape == (N, C, H, W)
    assert jnp.allclose(out, ref, atol=1e-4, rtol=1e-4), "mismatch vs. JAX reference"

    print("KERNEL_OK")
</pallas_src>

<mosaic_0001>
module attributes {stable_mosaic.version = 11 : i64} {
  func.func @_residual_block_kernel(%arg0: i32, %arg1: memref<4x512xf32, #tpu.memory_space<vmem>>, %arg2: memref<4x37xf32, #tpu.memory_space<vmem>>, %arg3: memref<4x37xf32, #tpu.memory_space<vmem>>, %arg4: memref<4x512xf32, #tpu.memory_space<vmem>>) attributes {dimension_semantics = [#tpu.dimension_semantics<arbitrary>], iteration_bounds = array<i64: 1>, scalar_prefetch = 0 : i64, scratch_operands = 0 : i64, tpu.core_type = #tpu.core_type<tc>, window_params = [{pipeline_mode = #tpu.pipeline_mode<synchronous>, transform_indices = @transform_0, window_bounds = array<i64: 4, 512>}, {pipeline_mode = #tpu.pipeline_mode<synchronous>, transform_indices = @transform_1, window_bounds = array<i64: 4, 37>}, {pipeline_mode = #tpu.pipeline_mode<synchronous>, transform_indices = @transform_2, window_bounds = array<i64: 4, 37>}, {pipeline_mode = #tpu.pipeline_mode<synchronous>, transform_indices = @transform_3, window_bounds = array<i64: 4, 512>}]} {
    %c0 = arith.constant 0 : index
    %c0_0 = arith.constant 0 : index
    %0 = vector.load %arg1[%c0, %c0_0] : memref<4x512xf32, #tpu.memory_space<vmem>>, vector<4x512xf32>
    %1 = tpu.iota {dimensions = array<i32: 1>} : vector<4x512xi32>
    %c255_i32 = arith.constant 255 : i32
    %2 = vector.broadcast %c255_i32 : i32 to vector<4x512xi32>
    %3 = arith.andi %1, %2 : vector<4x512xi32>
    %c4_i32 = arith.constant 4 : i32
    %4 = vector.broadcast %c4_i32 : i32 to vector<4x512xi32>
    %5 = arith.shrsi %3, %4 : vector<4x512xi32>
    %c15_i32 = arith.constant 15 : i32
    %6 = vector.broadcast %c15_i32 : i32 to vector<4x512xi32>
    %7 = arith.andi %3, %6 : vector<4x512xi32>
    %cst = arith.constant 1.000000e+00 : f32
    %8 = vector.broadcast %cst : f32 to vector<1x512xf32>
    %c1_i32 = arith.constant 1 : i32
    %9 = vector.broadcast %c1_i32 : i32 to vector<4x512xi32>
    %10 = arith.cmpi sge, %5, %9 : vector<4x512xi32>
    %c15_i32_1 = arith.constant 15 : i32
    %11 = vector.broadcast %c15_i32_1 : i32 to vector<4x512xi32>
    %12 = arith.cmpi slt, %5, %11 : vector<4x512xi32>
    %c1_i32_2 = arith.constant 1 : i32
    %13 = vector.broadcast %c1_i32_2 : i32 to vector<4x512xi32>
    %14 = arith.cmpi sge, %7, %13 : vector<4x512xi32>
    %c15_i32_3 = arith.constant 15 : i32
    %15 = vector.broadcast %c15_i32_3 : i32 to vector<4x512xi32>
    %16 = arith.cmpi slt, %7, %15 : vector<4x512xi32>
    %c17_i32 = arith.constant 17 : i32
    %17 = tpu.dynamic_rotate %0 by %c17_i32 dim 1 : vector<4x512xf32>, i32 -> vector<4x512xf32>
    %18 = arith.andi %10, %14 : vector<4x512xi1>
    %cst_4 = arith.constant 0.000000e+00 : f32
    %19 = vector.broadcast %cst_4 : f32 to vector<4x512xf32>
    %20 = arith.select %18, %17, %19 : vector<4x512xi1>, vector<4x512xf32>
    %c16_i32 = arith.constant 16 : i32
    %21 = tpu.dynamic_rotate %0 by %c16_i32 dim 1 : vector<4x512xf32>, i32 -> vector<4x512xf32>
    %cst_5 = arith.constant 0.000000e+00 : f32
    %22 = vector.broadcast %cst_5 : f32 to vector<4x512xf32>
    %23 = arith.select %10, %21, %22 : vector<4x512xi1>, vector<4x512xf32>
    %c15_i32_6 = arith.constant 15 : i32
    %24 = tpu.dynamic_rotate %0 by %c15_i32_6 dim 1 : vector<4x512xf32>, i32 -> vector<4x512xf32>
    %25 = arith.andi %10, %16 : vector<4x512xi1>
    %cst_7 = arith.constant 0.000000e+00 : f32
    %26 = vector.broadcast %cst_7 : f32 to vector<4x512xf32>
    %27 = arith.select %25, %24, %26 : vector<4x512xi1>, vector<4x512xf32>
    %c1_i32_8 = arith.constant 1 : i32
    %28 = tpu.dynamic_rotate %0 by %c1_i32_8 dim 1 : vector<4x512xf32>, i32 -> vector<4x512xf32>
    %cst_9 = arith.constant 0.000000e+00 : f32
    %29 = vector.broadcast %cst_9 : f32 to vector<4x512xf32>
    %30 = arith.select %14, %28, %29 : vector<4x512xi1>, vector<4x512xf32>
    %c511_i32 = arith.constant 511 : i32
    %31 = tpu.dynamic_rotate %0 by %c511_i32 dim 1 : vector<4x512xf32>, i32 -> vector<4x512xf32>
    %cst_10 = arith.constant 0.000000e+00 : f32
    %32 = vector.broadcast %cst_10 : f32 to vector<4x512xf32>
    %33 = arith.select %16, %31, %32 : vector<4x512xi1>, vector<4x512xf32>
    %c497_i32 = arith.constant 497 : i32
    %34 = tpu.dynamic_rotate %0 by %c497_i32 dim 1 : vector<4x512xf32>, i32 -> vector<4x512xf32>
    %35 = arith.andi %12, %14 : vector<4x512xi1>
    %cst_11 = arith.constant 0.000000e+00 : f32
    %36 = vector.broadcast %cst_11 : f32 to vector<4x512xf32>
    %37 = arith.select %35, %34, %36 : vector<4x512xi1>, vector<4x512xf32>
    %c496_i32 = arith.constant 496 : i32
    %38 = tpu.dynamic_rotate %0 by %c496_i32 dim 1 : vector<4x512xf32>, i32 -> vector<4x512xf32>
    %cst_12 = arith.constant 0.000000e+00 : f32
    %39 = vector.broadcast %cst_12 : f32 to vector<4x512xf32>
    %40 = arith.select %12, %38, %39 : vector<4x512xi1>, vector<4x512xf32>
    %c495_i32 = arith.constant 495 : i32
    %41 = tpu.dynamic_rotate %0 by %c495_i32 dim 1 : vector<4x512xf32>, i32 -> vector<4x512xf32>
    %42 = arith.andi %12, %16 : vector<4x512xi1>
    %cst_13 = arith.constant 0.000000e+00 : f32
    %43 = vector.broadcast %cst_13 : f32 to vector<4x512xf32>
    %44 = arith.select %42, %41, %43 : vector<4x512xi1>, vector<4x512xf32>
    %45 = tpu.concatenate %20, %23, %27, %30, %0, %33, %37, %40, %44, %8 in 0 : vector<4x512xf32>, vector<4x512xf32>, vector<4x512xf32>, vector<4x512xf32>, vector<4x512xf32>, vector<4x512xf32>, vector<4x512xf32>, vector<4x512xf32>, vector<4x512xf32>, vector<1x512xf32> -> vector<37x512xf32>
    %c0_14 = arith.constant 0 : index
    %c0_15 = arith.constant 0 : index
    %46 = vector.load %arg2[%c0_14, %c0_15] : memref<4x37xf32, #tpu.memory_space<vmem>>, vector<4x37xf32>
    %cst_16 = arith.constant dense<0.000000e+00> : vector<4x512xf32>
    %47 = tpu.matmul %46, %45, %cst_16 {dimension_numbers = #tpu.dot_dimension_numbers<[1], [0], [0], [1], [0, 0, 1, 1], [], []>} : vector<4x37xf32>, vector<37x512xf32>, vector<4x512xf32> -> vector<4x512xf32>
    %cst_17 = arith.constant 0.000000e+00 : f32
    %48 = vector.broadcast %cst_17 : f32 to vector<4x512xf32>
    %49 = arith.maximumf %47, %48 : vector<4x512xf32>
    %c2_i32 = arith.constant 2 : i32
    %50 = vector.broadcast %c2_i32 : i32 to vector<4x512xi32>
    %51 = arith.cmpi sge, %5, %50 : vector<4x512xi32>
    %c14_i32 = arith.constant 14 : i32
    %52 = vector.broadcast %c14_i32 : i32 to vector<4x512xi32>
    %53 = arith.cmpi slt, %5, %52 : vector<4x512xi32>
    %c2_i32_18 = arith.constant 2 : i32
    %54 = vector.broadcast %c2_i32_18 : i32 to vector<4x512xi32>
    %55 = arith.cmpi sge, %7, %54 : vector<4x512xi32>
    %c14_i32_19 = arith.constant 14 : i32
    %56 = vector.broadcast %c14_i32_19 : i32 to vector<4x512xi32>
    %57 = arith.cmpi slt, %7, %56 : vector<4x512xi32>
    %c34_i32 = arith.constant 34 : i32
    %58 = tpu.dynamic_rotate %49 by %c34_i32 dim 1 : vector<4x512xf32>, i32 -> vector<4x512xf32>
    %59 = arith.andi %51, %55 : vector<4x512xi1>
    %cst_20 = arith.constant 0.000000e+00 : f32
    %60 = vector.broadcast %cst_20 : f32 to vector<4x512xf32>
    %61 = arith.select %59, %58, %60 : vector<4x512xi1>, vector<4x512xf32>
    %c32_i32 = arith.constant 32 : i32
    %62 = tpu.dynamic_rotate %49 by %c32_i32 dim 1 : vector<4x512xf32>, i32 -> vector<4x512xf32>
    %cst_21 = arith.constant 0.000000e+00 : f32
    %63 = vector.broadcast %cst_21 : f32 to vector<4x512xf32>
    %64 = arith.select %51, %62, %63 : vector<4x512xi1>, vector<4x512xf32>
    %c30_i32 = arith.constant 30 : i32
    %65 = tpu.dynamic_rotate %49 by %c30_i32 dim 1 : vector<4x512xf32>, i32 -> vector<4x512xf32>
    %66 = arith.andi %51, %57 : vector<4x512xi1>
    %cst_22 = arith.constant 0.000000e+00 : f32
    %67 = vector.broadcast %cst_22 : f32 to vector<4x512xf32>
    %68 = arith.select %66, %65, %67 : vector<4x512xi1>, vector<4x512xf32>
    %c2_i32_23 = arith.constant 2 : i32
    %69 = tpu.dynamic_rotate %49 by %c2_i32_23 dim 1 : vector<4x512xf32>, i32 -> vector<4x512xf32>
    %cst_24 = arith.constant 0.000000e+00 : f32
    %70 = vector.broadcast %cst_24 : f32 to vector<4x512xf32>
    %71 = arith.select %55, %69, %70 : vector<4x512xi1>, vector<4x512xf32>
    %c510_i32 = arith.constant 510 : i32
    %72 = tpu.dynamic_rotate %49 by %c510_i32 dim 1 : vector<4x512xf32>, i32 -> vector<4x512xf32>
    %cst_25 = arith.constant 0.000000e+00 : f32
    %73 = vector.broadcast %cst_25 : f32 to vector<4x512xf32>
    %74 = arith.select %57, %72, %73 : vector<4x512xi1>, vector<4x512xf32>
    %c482_i32 = arith.constant 482 : i32
    %75 = tpu.dynamic_rotate %49 by %c482_i32 dim 1 : vector<4x512xf32>, i32 -> vector<4x512xf32>
    %76 = arith.andi %53, %55 : vector<4x512xi1>
    %cst_26 = arith.constant 0.000000e+00 : f32
    %77 = vector.broadcast %cst_26 : f32 to vector<4x512xf32>
    %78 = arith.select %76, %75, %77 : vector<4x512xi1>, vector<4x512xf32>
    %c480_i32 = arith.constant 480 : i32
    %79 = tpu.dynamic_rotate %49 by %c480_i32 dim 1 : vector<4x512xf32>, i32 -> vector<4x512xf32>
    %cst_27 = arith.constant 0.000000e+00 : f32
    %80 = vector.broadcast %cst_27 : f32 to vector<4x512xf32>
    %81 = arith.select %53, %79, %80 : vector<4x512xi1>, vector<4x512xf32>
    %c478_i32 = arith.constant 478 : i32
    %82 = tpu.dynamic_rotate %49 by %c478_i32 dim 1 : vector<4x512xf32>, i32 -> vector<4x512xf32>
    %83 = arith.andi %53, %57 : vector<4x512xi1>
    %cst_28 = arith.constant 0.000000e+00 : f32
    %84 = vector.broadcast %cst_28 : f32 to vector<4x512xf32>
    %85 = arith.select %83, %82, %84 : vector<4x512xi1>, vector<4x512xf32>
    %86 = tpu.concatenate %61, %64, %68, %71, %49, %74, %78, %81, %85, %8 in 0 : vector<4x512xf32>, vector<4x512xf32>, vector<4x512xf32>, vector<4x512xf32>, vector<4x512xf32>, vector<4x512xf32>, vector<4x512xf32>, vector<4x512xf32>, vector<4x512xf32>, vector<1x512xf32> -> vector<37x512xf32>
    %c0_29 = arith.constant 0 : index
    %c0_30 = arith.constant 0 : index
    %87 = vector.load %arg3[%c0_29, %c0_30] : memref<4x37xf32, #tpu.memory_space<vmem>>, vector<4x37xf32>
    %cst_31 = arith.constant dense<0.000000e+00> : vector<4x512xf32>
    %88 = tpu.matmul %87, %86, %cst_31 {dimension_numbers = #tpu.dot_dimension_numbers<[1], [0], [0], [1], [0, 0, 1, 1], [], []>} : vector<4x37xf32>, vector<37x512xf32>, vector<4x512xf32> -> vector<4x512xf32>
    %89 = arith.addf %88, %0 : vector<4x512xf32>
    %cst_32 = arith.constant 0.000000e+00 : f32
    %90 = vector.broadcast %cst_32 : f32 to vector<4x512xf32>
    %91 = arith.maximumf %89, %90 : vector<4x512xf32>
    %c0_33 = arith.constant 0 : index
    %c0_34 = arith.constant 0 : index
    %92 = vector.load %arg4[%c0_33, %c0_34] : memref<4x512xf32, #tpu.memory_space<vmem>>, vector<4x512xf32>
    tpu.vector_store %arg4[%c0_33, %c0_34], %91 {strides = array<i32>} : memref<4x512xf32, #tpu.memory_space<vmem>>, vector<4x512xf32>,
    return
  }
  func.func @transform_0(%arg0: i32) -> (i32, i32) {
    %c0_i32 = arith.constant 0 : i32
    %c0_i32_0 = arith.constant 0 : i32
    %c0_i32_1 = arith.constant 0 : i32
    return %c0_i32, %c0_i32_0 : i32, i32
  }
  func.func @transform_1(%arg0: i32) -> (i32, i32) {
    %c0_i32 = arith.constant 0 : i32
    %c0_i32_0 = arith.constant 0 : i32
    %c0_i32_1 = arith.constant 0 : i32
    return %c0_i32, %c0_i32_0 : i32, i32
  }
  func.func @transform_2(%arg0: i32) -> (i32, i32) {
    %c0_i32 = arith.constant 0 : i32
    %c0_i32_0 = arith.constant 0 : i32
    %c0_i32_1 = arith.constant 0 : i32
    return %c0_i32, %c0_i32_0 : i32, i32
  }
  func.func @transform_3(%arg0: i32) -> (i32, i32) {
    %c0_i32 = arith.constant 0 : i32
    %c0_i32_0 = arith.constant 0 : i32
    %c0_i32_1 = arith.constant 0 : i32
    return %c0_i32, %c0_i32_0 : i32, i32
  }
}

</mosaic_0001>

<bundles_post_ra>
// kernel: tpu_custom_call.1
= control target key start
LH: loop header
LB: loop body
LE: loop exit
PB: predicated region body
PF: predicated region fallthrough
CT: control target
= control target key end

     0   :  { %8 = vsyncpa [#allocation3], 0  ;;  %s2070_s0 = inlined_call_operand.hbm [shape: f32[4,512], index: 0, kind: input, shape index: {}]   ;;  %s2071_s1 = inlined_call_operand.hbm [shape: f32[4,37], index: 1, kind: input, shape index: {}]   ;;  %s2072_s2 = inlined_call_operand.hbm [shape: f32[4,37], index: 2, kind: input, shape index: {}]   ;;  %s2073_s3 = inlined_call_operand.hbm [shape: f32[4,512], index: 3, kind: output, shape index: {}]  }
   0x1   :  { %9 = vsyncpa [#allocation6], 0  ;;  %s27_s14 = sshll.u32 %s2071_s1, 4  ;;  %s28_s14 = int_to_ptr.hbm [resolvable:$true] %s27_s14 }
   0x2   :  { %10 = vsyncpa [#allocation4], 0  ;;  %s1150_s15 = smov [#allocation5]   ;;  %s16_s19 = sshll.u32 %s2070_s0, 4  ;;  %s17_s19 = int_to_ptr.hbm [resolvable:$true] %s16_s19 }
   0x3   :  { %s29_s16 = sshll.u32 %s1150_s15, 4  ;;  %s1151_s20 = smov [#allocation2]   ;;  %s30_s16 = int_to_ptr.vmem [resolvable:$true] %s29_s16 }
   0x4   :  { %32 = dma.hbm_to_vmem [thread:$0]  %s28_s14, 64, %s30_s16, [#allocation6]  }
   0x5   :  { %s18_s21 = sshll.u32 %s1151_s20, 4  ;;  %s38_s24 = sshll.u32 %s2072_s2, 4  ;;  %s19_s21 = int_to_ptr.vmem [resolvable:$true] %s18_s21  ;;  %s39_s24 = int_to_ptr.hbm [resolvable:$true] %s38_s24 }
   0x6   :  { %21 = dma.hbm_to_vmem [thread:$0]  %s17_s19, 256, %s19_s21, [#allocation3]  }
   0x7   :  { %s1152_s1 = smov [#allocation7]  }
   0x8   :  { %s40_s25 = sshll.u32 %s1152_s1, 4  ;;  %s41_s25 = int_to_ptr.vmem [resolvable:$true] %s40_s25 }
   0x9   :  { %43 = dma.hbm_to_vmem [thread:$0]  %s39_s24, 64, %s41_s25, [#allocation6]  }
   0xa   :  { %1144 = dma.done.wait [#allocation3], 256  }
   0xb   :  { %1145 = vsyncadd [#allocation3], 4294967040 }
   0xc   :  { %1146 = dma.done.wait [#allocation6], 128  }
   0xd   :  { %1147 = vsyncadd [#allocation6], 4294967168  ;;  %v1199_v0 = vld [vmem:[#allocation2 + $0x8] sm:$0xff]  ;;  %v1201_v1 = vld [vmem:[#allocation2] sm:$0xff]  ;;  %s1153_s0 = smov 17   ;;  %s1154_s2 = smov 16   ;;  %v58_v51 = vlaneseq }
   0xe   :  { %95 = vst [vmem:[#allocation1 + $0x10] ss:$2 sm:$0xff] %v1199_v0  ;;  %s1155_s26 = smov 15   ;;  %s1156_s27 = smov 1   ;;  %vm392_vm6 = vcmask 1043456  }
   0xf   :  { %93 = vst [vmem:[#allocation1] ss:$2 sm:$0xff] %v1201_v1  ;;  %s1157_s28 = smov 127   ;;  %s1158_s29 = smov 113   ;;  %v1255_v52 = vand.u32 127, %v58_v51 }
  0x10   :  { %s1159_s30 = smov 112   ;;  %s1160_s4 = smov 111  }
  0x11   :  { %v62_v56 = vadd.s32 384, %v1255_v52  ;;  %v61_v60 = vadd.s32 256, %v1255_v52  ;;  %v60_v62 = vadd.s32 128, %v1255_v52  ;;  %vm2075_vm1 = vcmp.lt.s32.totalorder %v1255_v52, 17  ;;  %s1161_s5 = smov 94   ;;  %s1162_s6 = smov 2  }
  0x12   :  { %vm2074_vm3 = vcmp.lt.s32.totalorder %v1255_v52, 16  ;;  %vm2078_vm4 = vcmp.lt.s32.totalorder %v1255_v52, 1  ;;  %vm292_vm7 = vcmp.lt.s32.totalorder %v1255_v52, 112  ;;  %vm232_vm9 = vcmp.lt.s32.totalorder %v1255_v52, 127  ;;  %s1163_s7 = smov 96   ;;  %s1164_s8 = smov 32  }
  0x13   :  { %v66_v59 = vand.u32 255, %v62_v56  ;;  %vm2077_vm11 = vcmp.lt.s32.totalorder %v1255_v52, 113  ;;  %vm2076_vm12 = vcmp.lt.s32.totalorder %v1255_v52, 15  ;;  %vm320_vm14 = vcmp.lt.s32.totalorder %v1255_v52, 111  ;;  %s1165_s9 = smov 126   ;;  %s1166_s10 = smov 30  }
  0x14   :  { %s1167_s11 = smov 98   ;;  %s1168_s12 = smov 34  }
  0x15   :  { %v98_v2 = vld.sshfl [vmem:[#allocation1 + $0x10] sm:$0xff pattern:$0x75316420]  ;;  %v99_v3 = vld.sshfl [vmem:[#allocation1 + $0x18] sm:$0xff pattern:$0x75316420] }
  0x16   :  { %127 = vst [vmem:[#allocation1 + $0x10] ss:$2 sm:$0xff] %v1199_v0  ;;  %v928_v4 = vpack.i.bf16 %v99_v3, %v98_v2  ;;  %v1206_v5 = vld.sshfl [vmem:[#allocation1] sm:$0xff pattern:$0x75316420]  ;;  %v1270_v61 = vshra.s32 %v66_v59, 4 }
  0x17   :  { %v1208_v6 = vld.sshfl [vmem:[#allocation1 + $0x8] sm:$0xff pattern:$0x75316420]  ;;  %v65_v2 = vand.u32 255, %v61_v60  ;;  %s1169_s13 = smov [#allocation8]   ;;  %s881_s17 = sshll.u32 %s2073_s3, 4  ;;  %s882_s17 = int_to_ptr.hbm [resolvable:$true] %s881_s17 }
  0x18   :  { %929 = vrot.lane.b32.xlu2 %v928_v4, %s1153_s0  ;;  %125 = vst [vmem:[#allocation1] ss:$2 sm:$0xff] %v1201_v1  ;;  %vm78_vm0 = vcmp.ge.s32.totalorder %v1270_v61, 1  ;;  %vm82_vm10 = vcmp.lt.s32.totalorder %v1270_v61, 15  ;;  %s879_s14 = sshll.u32 %s1169_s13, 4  ;;  %s880_s14 = int_to_ptr.vmem [resolvable:$true] %s879_s14 }
  0x1d   :  { %v130_v7 = vld.sshfl [vmem:[#allocation1 + $0x10] sm:$0xff pattern:$0x75316420]  ;;  %v131_v8 = vld.sshfl [vmem:[#allocation1 + $0x18] sm:$0xff pattern:$0x75316420] }
  0x1e   :  { %v933_v9 = vpack.i.bf16 %v131_v8, %v130_v7  ;;  %155 = vst [vmem:[#allocation1 + $0x10] ss:$2 sm:$0xff] %v1199_v0 }
  0x1f   :  { %v1213_v10 = vld.sshfl [vmem:[#allocation1] sm:$0xff pattern:$0x75316420]  ;;  %v1215_v11 = vld.sshfl [vmem:[#allocation1 + $0x8] sm:$0xff pattern:$0x75316420] }
  0x20   :  { %934 = vrot.lane.b32.xlu1 %v933_v9, %s1154_s2  ;;  %153 = vst [vmem:[#allocation1] ss:$2 sm:$0xff] %v1201_v1  ;;  %v983_v45 = vpack.i.bf16 %v1213_v10, %v1215_v11  ;;  %v1289_v10 = vand.u32 15, %v65_v2 }
  0x22   :  { %vm85_vm8 = vcmp.ge.s32.totalorder %v1289_v10, 1 }
  0x25   :  { %v158_v12 = vld.sshfl [vmem:[#allocation1 + $0x10] sm:$0xff pattern:$0x75316420]  ;;  %v159_v13 = vld.sshfl [vmem:[#allocation1 + $0x18] sm:$0xff pattern:$0x75316420] }
  0x26   :  { %187 = vst [vmem:[#allocation1 + $0x10] ss:$2 sm:$0xff] %v1199_v0  ;;  %v938_v14 = vpack.i.bf16 %v159_v13, %v158_v12 }
  0x27   :  { %v1220_v15 = vld.sshfl [vmem:[#allocation1] sm:$0xff pattern:$0x75316420]  ;;  %v157_v16 = vld.sshfl [vmem:[#allocation1 + $0x8] sm:$0xff pattern:$0x75316420] }
  0x28   :  { %185 = vst [vmem:[#allocation1] ss:$2 sm:$0xff] %v1201_v1  ;;  %939 = vrot.lane.b32.xlu2 %v938_v14, %s1155_s26 }
  0x2d   :  { %v190_v17 = vld.sshfl [vmem:[#allocation1 + $0x10] sm:$0xff pattern:$0x75316420]  ;;  %v191_v18 = vld.sshfl [vmem:[#allocation1 + $0x18] sm:$0xff pattern:$0x75316420] }
  0x2e   :  { %v943_v19 = vpack.i.bf16 %v191_v18, %v190_v17  ;;  %215 = vst [vmem:[#allocation1 + $0x10] ss:$2 sm:$0xff] %v1199_v0 }
  0x2f   :  { %v188_v20 = vld.sshfl [vmem:[#allocation1] sm:$0xff pattern:$0x75316420]  ;;  %v189_v21 = vld.sshfl [vmem:[#allocation1 + $0x8] sm:$0xff pattern:$0x75316420] }
  0x30   :  { %944 = vrot.lane.b32.xlu1 %v943_v19, %s1156_s27  ;;  %v948_v22 = vpack.i.bf16 %v188_v20, %v189_v21  ;;  %213 = vst [vmem:[#allocation1] ss:$2 sm:$0xff] %v1201_v1  ;;  %v1318_v19 = vshra.s32 %v65_v2, 4 }
  0x32   :  { %949 = vrot.lane.b32.xlu0 %v948_v22, %s1156_s27  ;;  %vm81_vm13 = vcmp.lt.s32.totalorder %v1318_v19, 15 }
  0x35   :  { %v218_v23 = vld.sshfl [vmem:[#allocation1 + $0x10] sm:$0xff pattern:$0x75316420]  ;;  %v219_v24 = vld.sshfl [vmem:[#allocation1 + $0x18] sm:$0xff pattern:$0x75316420] }
  0x36   :  { %243 = vst [vmem:[#allocation1 + $0x10] ss:$2 sm:$0xff] %v1199_v0 }
  0x37   :  { %v216_v25 = vld.sshfl [vmem:[#allocation1] sm:$0xff pattern:$0x75316420]  ;;  %v217_v26 = vld.sshfl [vmem:[#allocation1 + $0x8] sm:$0xff pattern:$0x75316420] }
  0x38   :  { %241 = vst [vmem:[#allocation1] ss:$2 sm:$0xff] %v1201_v1  ;;  %v958_v27 = vpack.i.bf16 %v217_v26, %v218_v23  ;;  %v953_v28 = vpack.i.bf16 %v219_v24, %v216_v25 }
  0x3a   :  { %959 = vrot.lane.b32.xlu2 %v958_v27, %s1157_s28  ;;  %954 = vrot.lane.b32.xlu1 %v953_v28, %s1157_s28 }
  0x3d   :  { %v246_v29 = vld.sshfl [vmem:[#allocation1 + $0x10] sm:$0xff pattern:$0x75316420]  ;;  %v247_v30 = vld.sshfl [vmem:[#allocation1 + $0x18] sm:$0xff pattern:$0x75316420] }
  0x3e   :  { %275 = vst [vmem:[#allocation1 + $0x10] ss:$2 sm:$0xff] %v1199_v0 }
  0x3f   :  { %v245_v31 = vld.sshfl [vmem:[#allocation1 + $0x8] sm:$0xff pattern:$0x75316420]  ;;  %v244_v32 = vld.sshfl [vmem:[#allocation1] sm:$0xff pattern:$0x75316420] }
  0x40   :  { %v968_v33 = vpack.i.bf16 %v245_v31, %v246_v29  ;;  %273 = vst [vmem:[#allocation1] ss:$2 sm:$0xff] %v1201_v1  ;;  %v963_v34 = vpack.i.bf16 %v247_v30, %v244_v32 }
  0x42   :  { %969 = vrot.lane.b32.xlu0 %v968_v33, %s1158_s29  ;;  %964 = vrot.lane.b32.xlu2 %v963_v34, %s1158_s29 }
  0x45   :  { %v278_v35 = vld.sshfl [vmem:[#allocation1 + $0x10] sm:$0xff pattern:$0x75316420]  ;;  %v279_v36 = vld.sshfl [vmem:[#allocation1 + $0x18] sm:$0xff pattern:$0x75316420] }
  0x46   :  { %303 = vst [vmem:[#allocation1 + $0x10] ss:$2 sm:$0xff] %v1199_v0 }
  0x47   :  { %v276_v37 = vld.sshfl [vmem:[#allocation1] sm:$0xff pattern:$0x75316420]  ;;  %v277_v38 = vld.sshfl [vmem:[#allocation1 + $0x8] sm:$0xff pattern:$0x75316420] }
  0x48   :  { %v973_v39 = vpack.i.bf16 %v279_v36, %v276_v37  ;;  %301 = vst [vmem:[#allocation1] ss:$2 sm:$0xff] %v1201_v1  ;;  %v978_v40 = vpack.i.bf16 %v277_v38, %v278_v35 }
  0x4a   :  { %974 = vrot.lane.b32.xlu0 %v973_v39, %s1159_s30  ;;  %979 = vrot.lane.b32.xlu2 %v978_v40, %s1159_s30 }
  0x4d   :  { %v307_v41 = vld.sshfl [vmem:[#allocation1 + $0x18] sm:$0xff pattern:$0x75316420]  ;;  %v306_v42 = vld.sshfl [vmem:[#allocation1 + $0x10] sm:$0xff pattern:$0x75316420] }
  0x4e   :  { %318 = vrot.lane.b32.xlu1 %v307_v41, %s1160_s4  ;;  %359 = vst [vmem:[#allocation1 + $0x10] ss:$2 sm:$0xff] %v1199_v0 }
  0x4f   :  { %v304_v43 = vld.sshfl [vmem:[#allocation1] sm:$0xff pattern:$0x75316420]  ;;  %v305_v44 = vld.sshfl [vmem:[#allocation1 + $0x8] sm:$0xff pattern:$0x75316420] }
  0x50   :  { %357 = vst [vmem:[#allocation1] ss:$2 sm:$0xff] %v1201_v1 }
  0x52   :  { %312 = vrot.lane.b32.xlu0 %v304_v43, %s1160_s4  ;;  %106 = vrot.lane.b32.xlu2 %v1208_v6, %s1153_s0  ;;  %v64_v6 = vand.u32 255, %v60_v62 }
  0x54   :  { %v1313_v17 = vand.u32 15, %v64_v6 }
  0x55   :  { %v1248_v48 = vld.sshfl [vmem:[#allocation1 + $0x18] sm:$0xff pattern:$0x75316420]  ;;  %v1250_v49 = vld.sshfl [vmem:[#allocation1 + $0x10] sm:$0xff pattern:$0x75316420] }
  0x56   :  { %166 = vrot.lane.b32.xlu1 %v157_v16, %s1155_s26  ;;  %754 = vst [vmem:[#allocation1 + $0x10] ss:$2 sm:$0xff] %v1199_v0  ;;  %v1275_v0 = vand.u32 15, %v66_v59  ;;  %v1311_v16 = vshra.s32 %v64_v6, 4 }
  0x57   :  { %v1259_v54 = vld.sshfl [vmem:[#allocation1] sm:$0xff pattern:$0x75316420]  ;;  %v1261_v55 = vld.sshfl [vmem:[#allocation1 + $0x8] sm:$0xff pattern:$0x75316420] }
  0x58   :  { %752 = vst [vmem:[#allocation1] ss:$2 sm:$0xff] %v1201_v1  ;;  %v63_v1 = vand.u32 255, %v1255_v52  ;;  %vm86_vm2 = vcmp.ge.s32.totalorder %v1275_v0, 1  ;;  %vm90_vm15 = vcmp.lt.s32.totalorder %v1275_v0, 15 }
  0x59   :  { %vm1307_vm5 = vmand %vm78_vm0, %vm86_vm2 }
  0x5a   :  { %316 = vrot.lane.b32.xlu0 %v306_v42, %s1160_s4  ;;  %v1294_v13 = vand.u32 15, %v63_v1  ;;  %v1342_v29 = vshra.s32 %v63_v1, 4 }
  0x5e   :  { %314 = vrot.lane.b32.xlu1 %v305_v44, %s1160_s4 }
  0x62   :  { %984 = vrot.lane.b32.xlu0 %v983_v45, %s1154_s2 }
  0x66   :  { %104 = vrot.lane.b32.xlu1 %v1206_v5, %s1153_s0 }
  0x6a   :  { %164 = vrot.lane.b32.xlu0 %v1220_v15, %s1155_s26 }
  0x72   :  { %v1244_v46 = vpop.permute.xlu2 %929 }
  0x73   :  { %v932_v4 = vunpack.i.h.bf16 %v1244_v46  ;;  %v931_v5 = vunpack.i.l.bf16 %v1244_v46 }
  0x75   :  { %v113_v14 = vsel %vm2075_vm1, %v931_v5, %v932_v4  ;;  %vm418_vm1 = vcmask 1044480  }
  0x76   :  { %v124_v27 = vsel %vm1307_vm5, %v113_v14, 0.0  ;;  %vm1367_vm5 = vmand %vm82_vm10, %vm86_vm2 }
  0x82   :  { %v1252_v50 = vpop.permute.xlu2 %939 }
  0x83   :  { %v942_v11 = vunpack.i.h.bf16 %v1252_v50  ;;  %v941_v12 = vunpack.i.l.bf16 %v1252_v50 }
  0x85   :  { %v173_v44 = vsel %vm2076_vm12, %v941_v12, %v942_v11  ;;  %vm1410_vm12 = vmand %vm78_vm0, %vm90_vm15 }
  0x86   :  { %v184_v38 = vsel %vm1410_vm12, %v173_v44, 0.0  ;;  %vm2080_vm12 = vcmp.lt.s32.totalorder %v1294_v13, 15 }
  0x92   :  { %v1246_v47 = vpop.permute.xlu1 %934 }
  0x93   :  { %v937_v7 = vunpack.i.h.bf16 %v1246_v47  ;;  %v936_v8 = vunpack.i.l.bf16 %v1246_v47 }
  0x94   :  { %v1267_v58 = vpop.permute.xlu2 %959 }
  0x95   :  { %v145_v20 = vsel %vm2074_vm3, %v936_v8, %v937_v7  ;;  %v962_v25 = vunpack.i.h.bf16 %v1267_v58  ;;  %v961_v26 = vunpack.i.l.bf16 %v1267_v58  ;;  %vm1381_vm3 = vmand %vm82_vm10, %vm90_vm15 }
  0x96   :  { %v152_v33 = vsel %vm78_vm0, %v145_v20, 0.0  ;;  %vm77_vm0 = vcmp.ge.s32.totalorder %v1318_v19, 1 }
  0x97   :  { %v340_v45 = vrot.slane %v152_v33, 4 }
  0x9c   :  { %v1287_v9 = vpop.permute.xlu2 %964 }
  0x9d   :  { %v967_v34 = vunpack.i.h.bf16 %v1287_v9  ;;  %v966_v35 = vunpack.i.l.bf16 %v1287_v9 }
  0x9f   :  { %v264_v43 = vsel %vm2077_vm11, %v967_v34, %v966_v35  ;;  %vm79_vm11 = vcmp.lt.s32.totalorder %v1342_v29, 15 }
  0xa0   :  { %v272_v20 = vsel %vm1367_vm5, %v264_v43, 0.0  ;;  %vm2079_vm5 = vcmp.lt.s32.totalorder %v1313_v17, 15 }
  0xa2   :  { %v1265_v57 = vpop.permute.xlu1 %944 }
  0xa3   :  { %v947_v30 = vunpack.i.h.bf16 %v1265_v57  ;;  %v946_v31 = vunpack.i.l.bf16 %v1265_v57 }
  0xa4   :  { %v1257_v53 = vpop.permute.xlu0 %949  ;;  %v980_v41 = vpop.permute.xlu2 %979 }
  0xa5   :  { %v951_v36 = vunpack.i.l.bf16 %v1257_v53  ;;  %v205_v40 = vsel %vm2078_vm4, %v946_v31, %v947_v30  ;;  %v982_v51 = vunpack.i.h.bf16 %v980_v41  ;;  %v981_v56 = vunpack.i.l.bf16 %v980_v41 }
  0xa6   :  { %v212_v6 = vsel %vm86_vm2, %v205_v40, 0.0  ;;  %vm84_vm2 = vcmp.ge.s32.totalorder %v1313_v17, 1  ;;  %v952_v44 = vunpack.i.h.bf16 %v1257_v53 }
  0xa7   :  { %v206_v14 = vsel %vm2078_vm4, %v951_v36, %v946_v31  ;;  %v352_v40 = vrot.slane %v212_v6, 4  ;;  %v294_v43 = vsel %vm292_vm7, %v982_v51, %v981_v56 }
  0xa8   :  { %v1439_v41 = vsel %vm85_vm8, %v206_v14, 0.0 }
  0xa9   :  { %v400_v6 = vsel %vm392_vm6, %v184_v38, %v352_v40 }
  0xac   :  { %v1277_v3 = vpop.permute.xlu1 %954 }
  0xad   :  { %v957_v21 = vunpack.i.h.bf16 %v1277_v3  ;;  %v956_v22 = vunpack.i.l.bf16 %v1277_v3 }
  0xaf   :  { %v236_v37 = vsel %vm232_vm9, %v957_v21, %v956_v22  ;;  %v233_v42 = vsel %vm232_vm9, %v961_v26, %v957_v21 }
  0xb0   :  { %v240_v60 = vsel %vm90_vm15, %v236_v37, 0.0  ;;  %v396_v37 = vsel %vm392_vm6, %v124_v27, %v340_v45  ;;  %vm1483_vm15 = vmand %vm81_vm13, %vm85_vm8 }
  0xb1   :  { %v375_v33 = vrot.slane %v240_v60, 4 }
  0xb3   :  { %v404_v60 = vsel %vm392_vm6, %v1248_v48, %v375_v33  ;;  %v234_v48 = vsel %vm232_vm9, %v962_v25, %v961_v26 }
  0xb4   :  { %v1273_v63 = vpop.permute.xlu0 %969 }
  0xbc   :  { %v1315_v18 = vpop.permute.xlu0 %974 }
  0xbd   :  { %v977_v23 = vunpack.i.h.bf16 %v1315_v18  ;;  %v976_v24 = vunpack.i.l.bf16 %v1315_v18 }
  0xbf   :  { %v296_v28 = vsel %vm292_vm7, %v977_v23, %v976_v24 }
  0xc0   :  { %v1346_v32 = vpop.permute.xlu1 %318  ;;  %v300_v39 = vsel %vm82_vm10, %v296_v28, 0.0  ;;  %vm80_vm10 = vcmp.lt.s32.totalorder %v1311_v16, 15 }
  0xc1   :  { %v387_v2 = vrot.slane %v300_v39, 4  ;;  %v293_v39 = vsel %vm292_vm7, %v981_v56, %v977_v23  ;;  %v971_v23 = vunpack.i.l.bf16 %v1273_v63  ;;  %v351_v56 = vrot.slane %v1439_v41, 4 }
  0xc2   :  { %v299_v45 = vsel %vm81_vm13, %v293_v39, 0.0 }
  0xc3   :  { %v408_v27 = vsel %vm392_vm6, %v272_v20, %v387_v2  ;;  %v972_v2 = vunpack.i.h.bf16 %v1273_v63  ;;  %v235_v63 = vsel %vm232_vm9, %v956_v22, %v962_v25  ;;  %vm1519_vm9 = vmand %vm79_vm11, %vm2080_vm12  ;;  %v1523_v25 = vld [vmem:[#allocation5] sm:$0xf] }
  0xc4   :  { %v1398_v59 = vpop.permute.xlu0 %312  ;;  %v237_v38 = vsel %vm2080_vm12, %v235_v63, 0.0  ;;  %vm1558_vm12 = vmand %vm80_vm10, %vm84_vm2 }
  0xc5   :  { %v324_v62 = vsel %vm320_vm14, %v1346_v32, %v1398_v59 }
  0xc6   :  { %v332_v15 = vsel %vm1381_vm3, %v324_v62, 0.0  ;;  %vm89_vm3 = vcmp.lt.s32.totalorder %v1289_v10, 15  ;;  %v295_v62 = vsel %vm292_vm7, %v976_v24, %v982_v51  ;;  %v298_v51 = vsel %vm80_vm10, %v294_v43, 0.0 }
  0xc7   :  { %v412_v28 = vsel %vm392_vm6, %v332_v15, 1.0  ;;  %vm1463_vm4 = vmand %vm81_vm13, %vm89_vm3  ;;  %v239_v24 = vsel %vm89_vm3, %v233_v42, 0.0  ;;  %vm2096_vm7 = vcmp.lt.s32.totalorder %v1255_v52, 113  ;;  %v386_v15 = vrot.slane %v299_v45, 4 }
  0xc8   :  { %898 = vmatpush.msk.msra.mxu3 %vm418_vm1, %v412_v28  ;;  %v1432_v31 = vpop.permute.xlu1 %166  ;;  %v261_v14 = vsel %vm2096_vm7, %v971_v23, %v967_v34  ;;  %vm1509_vm13 = vmand %vm77_vm0, %vm89_vm3  ;;  %vm2081_vm7 = vcmask 302080   ;;  %v238_v34 = vsel %vm2079_vm5, %v234_v48, 0.0  ;;  %v374_v33 = vrot.slane %v239_v24, 4  ;;  %v107_v24 = vpop.permute.xlu2 %106 }
  0xc9   :  { %vm1539_vm3 = vmand %vm80_vm10, %vm2079_vm5 }
  0xca   :  { %503 = vmatpush.msra.mxu3 %v408_v27  ;;  %v403_v48 = vsel %vm392_vm6, %v1250_v49, %v374_v33 }
  0xcc   :  { %504 = vmatpush.msra.mxu3 %v404_v60  ;;  %v317_v1 = vpop.permute.xlu0 %316 }
  0xcd   :  { %v321_v26 = vsel %vm320_vm14, %v317_v1, %v1346_v32  ;;  %v297_v32 = vsel %vm79_vm11, %v295_v62, 0.0  ;;  %v372_v62 = vrot.slane %v237_v38, 4 }
  0xce   :  { %505 = vmatpush.msra.mxu3 %v400_v6  ;;  %v331_v3 = vsel %vm1463_vm4, %v321_v26, 0.0  ;;  %vm2101_vm4 = vcmp.lt.s32.totalorder %v1255_v52, 15  ;;  %v384_v45 = vrot.slane %v297_v32, 4  ;;  %v373_v26 = vrot.slane %v238_v34, 4 }
  0xcf   :  { %v174_v20 = vsel %vm2101_vm4, %v1432_v31, %v941_v12  ;;  %v411_v28 = vsel %vm392_vm6, %v331_v3, 1.0  ;;  %v271_v12 = vsel %vm1483_vm15, %v261_v14, 0.0  ;;  %vm2104_vm4 = vcmp.lt.s32.totalorder %v1255_v52, 113 }
  0xd0   :  { %896 = vmatpush.msk.msra.mxu2 %vm418_vm1, %v411_v28  ;;  %506 = vmatpush.msra.mxu3 %v396_v37  ;;  %v315_v40 = vpop.permute.xlu1 %314  ;;  %v263_v41 = vsel %vm2104_vm4, %v966_v35, %v972_v2  ;;  %vm2105_vm5 = vmmov %vm2104_vm4  ;;  %v385_v37 = vrot.slane %v298_v51, 4  ;;  %v407_v35 = vsel %vm392_vm6, %v271_v12, %v386_v15  ;;  %vm2108_vm15 = vcmp.ge.s32.totalorder %v1294_v13, 1 }
  0xd1   :  { %v262_v27 = vsel %vm2105_vm5, %v972_v2, %v971_v23  ;;  %v322_v43 = vsel %vm320_vm14, %v315_v40, %v317_v1  ;;  %v323_v9 = vsel %vm320_vm14, %v1398_v59, %v315_v40  ;;  %899 = vmatmul.msk.f32.vlgmr.msra.gmra.mxu3 %vm2081_vm7, %v1523_v25  ;;  %vm1574_vm10 = vmand %vm79_vm11, %vm2108_vm15  ;;  %v183_v21 = vsel %vm1509_vm13, %v174_v20, 0.0 }
  0xd2   :  { %483 = vmatpush.msra.mxu2 %v407_v35  ;;  %v329_v60 = vsel %vm1519_vm9, %v323_v9, 0.0  ;;  %v330_v59 = vsel %vm1539_vm3, %v322_v43, 0.0  ;;  %v270_v18 = vsel %vm1558_vm12, %v262_v27, 0.0  ;;  %v269_v63 = vsel %vm1574_vm10, %v263_v41, 0.0  ;;  %vm1619_vm5 = vmand %vm77_vm0, %vm85_vm8 }
  0xd3   :  { %v409_v2 = vsel %vm392_vm6, %v329_v60, 1.0  ;;  %v410_v1 = vsel %vm392_vm6, %v330_v59, 1.0  ;;  %v399_v49 = vsel %vm392_vm6, %v183_v21, %v351_v56  ;;  %v405_v15 = vsel %vm392_vm6, %v269_v63, %v384_v45  ;;  %vm2117_vm3 = vmmov %vm2108_vm15 }
  0xd4   :  { %484 = vmatpush.msra.mxu2 %v403_v48  ;;  %v985_v51 = vpop.permute.xlu0 %984  ;;  %892 = vmatpush.msk.msra.mxu0 %vm418_vm1, %v409_v2  ;;  %v406_v58 = vsel %vm392_vm6, %v270_v18, %v385_v37  ;;  %vm2111_vm11 = vcmp.lt.s32.totalorder %v1255_v52, 1  ;;  %vm2113_vm12 = vcmp.lt.s32.totalorder %v1255_v52, 17  ;;  %v401_v32 = vsel %vm392_vm6, %v1259_v54, %v372_v62 }
  0xd5   :  { %v987_v6 = vunpack.i.h.bf16 %v985_v51  ;;  %v986_v14 = vunpack.i.l.bf16 %v985_v51  ;;  %894 = vmatpush.msk.msra.mxu1 %vm418_vm1, %v410_v1  ;;  %v208_v3 = vsel %vm2111_vm11, %v947_v30, %v952_v44  ;;  %vm2112_vm14 = vmmov %vm2111_vm11  ;;  %v114_v22 = vsel %vm2113_vm12, %v107_v24, %v931_v5 }
  0xd6   :  { %485 = vmatpush.msra.mxu2 %v399_v49  ;;  %443 = vmatpush.msra.mxu0 %v405_v15  ;;  %v207_v56 = vsel %vm2112_vm14, %v952_v44, %v951_v36  ;;  %vm2116_vm13 = vcmp.lt.s32.totalorder %v1255_v52, 16  ;;  %vm75_vm9 = vcmp.ge.s32.totalorder %v1342_v29, 1  ;;  %v402_v54 = vsel %vm392_vm6, %v1261_v55, %v373_v26  ;;  %vm2127_vm12 = vmmov %vm2117_vm3 }
  0xd7   :  { %463 = vmatpush.msra.mxu1 %v406_v58  ;;  %v146_v53 = vsel %vm2116_vm13, %v986_v14, %v936_v8  ;;  %vm76_vm8 = vcmp.ge.s32.totalorder %v1311_v16, 1  ;;  %vm1637_vm4 = vmand %vm75_vm9, %vm2117_vm3  ;;  %v123_v20 = vsel %vm1619_vm5, %v114_v22, 0.0  ;;  %vm2124_vm11 = vcmp.lt.s32.totalorder %v1294_v13, 15 }
  0xd8   :  { %v105_v5 = vpop.permute.xlu1 %104  ;;  %444 = vmatpush.msra.mxu0 %v401_v32  ;;  %v151_v30 = vsel %vm77_vm0, %v146_v53, 0.0  ;;  %vm2120_vm15 = vmmov %vm2116_vm13  ;;  %v210_v28 = vsel %vm84_vm2, %v207_v56, 0.0  ;;  %vm2130_vm3 = vcmp.lt.s32.totalorder %v1313_v17, 15 }
  0xd9   :  { %464 = vmatpush.msra.mxu1 %v402_v54  ;;  %v339_v8 = vrot.slane %v151_v30, 4  ;;  %v148_v55 = vsel %vm2120_vm15, %v937_v7, %v987_v6  ;;  %vm1649_vm0 = vmand %vm76_vm8, %vm84_vm2  ;;  %v209_v7 = vsel %vm2127_vm12, %v208_v3, 0.0  ;;  %vm2133_vm2 = vcmp.lt.s32.totalorder %v1255_v52, 15 }
  0xda   :  { %vm2123_vm10 = vmmov %vm2116_vm13  ;;  %vm2128_vm13 = vcmp.lt.s32.totalorder %v1255_v52, 17  ;;  %v149_v41 = vsel %vm75_vm9, %v148_v55, 0.0  ;;  %v349_v42 = vrot.slane %v209_v7, 4  ;;  %v350_v37 = vrot.slane %v210_v28, 4 }
  0xdb   :  { %v147_v34 = vsel %vm2123_vm10, %v987_v6, %v986_v14  ;;  %vm1661_vm14 = vmand %vm75_vm9, %vm2124_vm11  ;;  %v115_v33 = vsel %vm2128_vm13, %v105_v5, %v107_v24  ;;  %v395_v38 = vsel %vm392_vm6, %v123_v20, %v339_v8  ;;  %v337_v23 = vrot.slane %v149_v41, 4 }
  0xdc   :  { %vm2129_vm5 = vmmov %vm2128_vm13  ;;  %v165_v12 = vpop.permute.xlu0 %164  ;;  %486 = vmatpush.msra.mxu2 %v395_v38  ;;  %v150_v46 = vsel %vm76_vm8, %v147_v34, 0.0  ;;  %v122_v50 = vsel %vm1649_vm0, %v115_v33, 0.0  ;;  %vm530_vm9 = vcmp.lt.s32.totalorder %v1275_v0, 14  ;;  %vm527_vm11 = vcmp.lt.s32.totalorder %v1294_v13, 14 }
  0xdd   :  { %v116_v39 = vsel %vm2129_vm5, %v932_v4, %v105_v5  ;;  %vm1680_vm15 = vmand %vm76_vm8, %vm2130_vm3  ;;  %v175_v4 = vsel %vm2133_vm2, %v165_v12, %v1432_v31  ;;  %897 = vmatmul.msk.f32.vlgmr.msra.gmra.mxu2 %vm2081_vm7, %v1523_v25  ;;  %v338_v45 = vrot.slane %v150_v46, 4  ;;  %vm670_vm8 = vcmp.lt.s32.totalorder %v1255_v52, 94 }
  0xde   :  { %vm2134_vm10 = vmmov %vm2133_vm2  ;;  %v182_v9 = vsel %vm1680_vm15, %v175_v4, 0.0  ;;  %v121_v35 = vsel %vm1637_vm4, %v116_v39, 0.0  ;;  %vm522_vm4 = vcmp.lt.s32.totalorder %v1270_v61, 14  ;;  %vm528_vm12 = vcmp.lt.s32.totalorder %v1313_v17, 14 }
  0xdf   :  { %v176_v27 = vsel %vm2134_vm10, %v942_v11, %v165_v12  ;;  %v398_v11 = vsel %vm392_vm6, %v182_v9, %v350_v37  ;;  %v393_v60 = vsel %vm392_vm6, %v121_v35, %v337_v23  ;;  %v394_v59 = vsel %vm392_vm6, %v122_v50, %v338_v45  ;;  %vm678_vm0 = vmand %vm522_vm4, %vm530_vm9 }
  0xe0   :  { %v181_v43 = vsel %vm1661_vm14, %v176_v27, 0.0  ;;  %465 = vmatpush.msra.mxu1 %v398_v11  ;;  %vm520_vm14 = vcmp.lt.s32.totalorder %v1311_v16, 14  ;;  %vm519_vm13 = vcmp.lt.s32.totalorder %v1342_v29, 14  ;;  %vm529_vm5 = vcmp.lt.s32.totalorder %v1289_v10, 14 }
  0xe1   :  { %v397_v31 = vsel %vm392_vm6, %v181_v43, %v349_v42  ;;  %vm675_vm3 = vmand %vm519_vm13, %vm527_vm11  ;;  %vm521_vm2 = vcmp.lt.s32.totalorder %v1318_v19, 14 }
  0xe2   :  { %445 = vmatpush.msra.mxu0 %v397_v31  ;;  %466 = vmatpush.msra.mxu1 %v394_v59  ;;  %vm1773_vm15 = vmand %vm520_vm14, %vm528_vm12 }
  0xe3   :  { %895 = vmatmul.msk.f32.vlgmr.msra.gmra.mxu1 %vm2081_vm7, %v1523_v25  ;;  %vm1784_vm10 = vmand %vm521_vm2, %vm529_vm5 }
  0xe4   :  { %446 = vmatpush.msra.mxu0 %v393_v60 }
  0xe5   :  { %893 = vmatmul.msk.f32.vlgmr.msra.gmra.mxu0 %vm2081_vm7, %v1523_v25  ;;  %vm2083_vm7 = vcmp.ge.s32.totalorder %v1313_v17, 2 }
 0x154   :  { %v508_v21 = vpop.f32.mrf.mxu3 }
 0x155   :  { %v1713_v62 = vmax.f32 %v508_v21, 0.0 }
 0x157   :  { %668 = vrot.lane.b32.xlu1 %v1713_v62, %s1161_s5 }
 0x160   :  { %v468_v2 = vpop.f32.mrf.mxu1  ;;  %v488_v24 = vpop.f32.mrf.mxu2 }
 0x161   :  { %v1719_v18 = vmax.f32 %v468_v2, 0.0  ;;  %v1721_v51 = vmax.f32 %v488_v24, 0.0 }
 0x162   :  { %v448_v48 = vpop.f32.mrf.mxu0 }
 0x163   :  { %v1717_v1 = vmax.f32 %v448_v48, 0.0  ;;  %v1013_v63 = vpack.i.bf16 %v1719_v18, %v1721_v51  ;;  %v1038_v6 = vpack.i.bf16 %v1713_v62, %v1721_v51 }
 0x165   :  { %662 = vrot.lane.b32.xlu0 %v1717_v1, %s1161_s5  ;;  %v988_v25 = vpack.i.bf16 %v1717_v1, %v1719_v18  ;;  %1014 = vrot.lane.b32.xlu1 %v1013_v63, %s1163_s7  ;;  %v998_v26 = vpack.i.bf16 %v1713_v62, %v1717_v1 }
 0x167   :  { %989 = vrot.lane.b32.xlu2 %v988_v25, %s1162_s6 }
 0x16d   :  { %664 = vrot.lane.b32.xlu0 %v1719_v18, %s1161_s5  ;;  %1024 = vrot.lane.b32.xlu1 %v1013_v63, %s1165_s9 }
 0x16f   :  { %994 = vrot.lane.b32.xlu2 %v988_v25, %s1164_s8 }
 0x175   :  { %571 = vrot.lane.b32.xlu0 %v1719_v18, %s1166_s10  ;;  %1039 = vrot.lane.b32.xlu1 %v1038_v6, %s1166_s10 }
 0x177   :  { %999 = vrot.lane.b32.xlu2 %v998_v26, %s1163_s7 }
 0x17d   :  { %1009 = vrot.lane.b32.xlu0 %v998_v26, %s1167_s11  ;;  %1044 = vrot.lane.b32.xlu1 %v1038_v6, %s1168_s12 }
 0x17f   :  { %1004 = vrot.lane.b32.xlu2 %v998_v26, %s1165_s9 }
 0x185   :  { %1019 = vrot.lane.b32.xlu0 %v1038_v6, %s1162_s6  ;;  %533 = vrot.lane.b32.xlu1 %v1719_v18, %s1168_s12 }
 0x187   :  { %666 = vrot.lane.b32.xlu2 %v1721_v51, %s1161_s5 }
 0x18d   :  { %1034 = vrot.lane.b32.xlu0 %v1038_v6, %s1164_s8 }
 0x18f   :  { %1029 = vrot.lane.b32.xlu2 %v1013_v63, %s1167_s11 }
 0x195   :  { %531 = vrot.lane.b32.xlu0 %v1717_v1, %s1168_s12 }
 0x197   :  { %569 = vrot.lane.b32.xlu2 %v1717_v1, %s1166_s10 }
 0x1c1   :  { %v1741_v14 = vpop.permute.xlu2 %989 }
 0x1c2   :  { %v992_v8 = vunpack.i.h.bf16 %v1741_v14  ;;  %v991_v34 = vunpack.i.l.bf16 %v1741_v14 }
 0x1c9   :  { %v1743_v49 = vpop.permute.xlu2 %994  ;;  %v669_v15 = vpop.permute.xlu1 %668 }
 0x1d1   :  { %v1745_v58 = vpop.permute.xlu2 %999 }
 0x1d2   :  { %v1002_v43 = vunpack.i.h.bf16 %v1745_v58  ;;  %v1001_v9 = vunpack.i.l.bf16 %v1745_v58 }
 0x1d7   :  { %v663_v3 = vpop.permute.xlu0 %662  ;;  %v1015_v57 = vpop.permute.xlu1 %1014 }
 0x1d8   :  { %v674_v56 = vsel %vm670_vm8, %v669_v15, %v663_v3  ;;  %v1017_v12 = vunpack.i.h.bf16 %v1015_v57  ;;  %v1016_v41 = vunpack.i.l.bf16 %v1015_v57 }
 0x1d9   :  { %v1756_v22 = vpop.permute.xlu2 %1004  ;;  %v682_v32 = vsel %vm678_vm0, %v674_v56, 0.0  ;;  %vm2082_vm0 = vcmp.lt.s32.totalorder %v1255_v52, 2 }
 0x1da   :  { %v750_v53 = vsel %vm392_vm6, %v682_v32, 1.0  ;;  %v601_v37 = vsel %vm2082_vm0, %v992_v8, %v991_v34  ;;  %v1007_v35 = vunpack.i.h.bf16 %v1756_v22  ;;  %v1006_v50 = vunpack.i.l.bf16 %v1756_v22 }
 0x1db   :  { %906 = vmatpush.msk.msrb.mxu3 %vm418_vm1, %v750_v53  ;;  %vm523_vm0 = vcmp.ge.s32.totalorder %v1294_v13, 2  ;;  %v604_v48 = vsel %vm2083_vm7, %v601_v37, 0.0 }
 0x1dc   :  { %v700_v22 = vrot.slane %v604_v48, 4 }
 0x1df   :  { %v665_v5 = vpop.permute.xlu0 %664  ;;  %v1025_v20 = vpop.permute.xlu1 %1024 }
 0x1e0   :  { %v673_v30 = vsel %vm670_vm8, %v663_v3, %v665_v5  ;;  %v1027_v33 = vunpack.i.h.bf16 %v1025_v20  ;;  %v1026_v39 = vunpack.i.l.bf16 %v1025_v20 }
 0x1e1   :  { %v667_v55 = vpop.permute.xlu2 %666  ;;  %v679_v44 = vsel %vm675_vm3, %v673_v30, 0.0  ;;  %vm615_vm3 = vcmp.lt.s32.totalorder %v1255_v52, 126 }
 0x1e2   :  { %v671_v47 = vsel %vm670_vm8, %v667_v55, %v669_v15  ;;  %v672_v7 = vsel %vm670_vm8, %v665_v5, %v667_v55  ;;  %v747_v28 = vsel %vm392_vm6, %v679_v44, 1.0  ;;  %vm653_vm8 = vcmp.lt.s32.totalorder %v1255_v52, 96 }
 0x1e3   :  { %900 = vmatpush.msk.msrb.mxu0 %vm418_vm1, %v747_v28  ;;  %v680_v38 = vsel %vm1773_vm15, %v672_v7, 0.0  ;;  %v681_v40 = vsel %vm1784_vm10, %v671_v47, 0.0  ;;  %v655_v27 = vsel %vm653_vm8, %v1017_v12, %v1016_v41  ;;  %v617_v42 = vsel %vm615_vm3, %v1027_v33, %v1026_v39  ;;  %vm1834_vm10 = vmand %vm520_vm14, %vm2083_vm7 }
 0x1e4   :  { %v748_v46 = vsel %vm392_vm6, %v680_v38, 1.0  ;;  %v749_v4 = vsel %vm392_vm6, %v681_v40, 1.0  ;;  %v659_v23 = vsel %vm520_vm14, %v655_v27, 0.0  ;;  %v621_v45 = vsel %vm528_vm12, %v617_v42, 0.0 }
 0x1e5   :  { %902 = vmatpush.msk.msrb.mxu1 %vm418_vm1, %v748_v46  ;;  %904 = vmatpush.msk.msrb.mxu2 %vm418_vm1, %v749_v4  ;;  %vm632_vm1 = vcmp.lt.s32.totalorder %v1255_v52, 98  ;;  %vm516_vm15 = vcmp.ge.s32.totalorder %v1311_v16, 2  ;;  %v656_v24 = vsel %vm653_vm8, %v1001_v9, %v1017_v12  ;;  %v654_v25 = vsel %vm653_vm8, %v1016_v41, %v1002_v43 }
 0x1e6   :  { %v657_v63 = vsel %vm653_vm8, %v1002_v43, %v1001_v9  ;;  %v619_v26 = vsel %vm615_vm3, %v1007_v35, %v1006_v50  ;;  %v724_v15 = vrot.slane %v659_v23, 4  ;;  %v712_v58 = vrot.slane %v621_v45, 4 }
 0x1e7   :  { %v1822_v31 = vpop.permute.xlu0 %571  ;;  %v1841_v2 = vpop.permute.xlu1 %1039  ;;  %v618_v3 = vsel %vm615_vm3, %v1006_v50, %v1027_v33  ;;  %vm525_vm14 = vcmp.ge.s32.totalorder %v1289_v10, 2  ;;  %v616_v32 = vsel %vm615_vm3, %v1026_v39, %v1007_v35  ;;  %v658_v53 = vsel %vm519_vm13, %v656_v24, 0.0  ;;  %vm1872_vm3 = vmand %vm519_vm13, %vm523_vm0 }
 0x1e8   :  { %v661_v5 = vsel %vm522_vm4, %v657_v63, 0.0  ;;  %v623_v54 = vsel %vm530_vm9, %v619_v26, 0.0  ;;  %vm577_vm8 = vcmp.lt.s32.totalorder %v1255_v52, 30  ;;  %v660_v55 = vsel %vm521_vm2, %v654_v25, 0.0  ;;  %vm1887_vm13 = vmand %vm516_vm15, %vm528_vm12 }
 0x1e9   :  { %v1030_v11 = vpop.permute.xlu2 %1029  ;;  %v620_v44 = vsel %vm527_vm11, %v618_v3, 0.0  ;;  %v740_v7 = vsel %vm392_vm6, %v1719_v18, %v712_v58  ;;  %v622_v33 = vsel %vm529_vm5, %v616_v32, 0.0  ;;  %v723_v38 = vrot.slane %v658_v53, 4  ;;  %vm1897_vm7 = vmand %vm521_vm2, %vm525_vm14 }
 0x1ea   :  { %v1032_v60 = vunpack.i.h.bf16 %v1030_v11  ;;  %v1031_v59 = vunpack.i.l.bf16 %v1030_v11  ;;  %v726_v40 = vrot.slane %v661_v5, 4  ;;  %v714_v12 = vrot.slane %v623_v54, 4 }
 0x1eb   :  { %vm517_vm12 = vcmp.ge.s32.totalorder %v1318_v19, 2  ;;  %v711_v42 = vrot.slane %v620_v44, 4  ;;  %v725_v9 = vrot.slane %v660_v55, 4  ;;  %v713_v35 = vrot.slane %v622_v33, 4 }
 0x1ec   :  { %v634_v6 = vsel %vm632_vm1, %v1032_v60, %v1031_v59  ;;  %v742_v58 = vsel %vm392_vm6, %v1713_v62, %v714_v12  ;;  %v997_v3 = vunpack.i.h.bf16 %v1743_v49  ;;  %v996_v5 = vunpack.i.l.bf16 %v1743_v49 }
 0x1ed   :  { %v642_v56 = vsel %vm1834_vm10, %v634_v6, 0.0  ;;  %vm526_vm10 = vcmp.ge.s32.totalorder %v1275_v0, 2  ;;  %v739_v63 = vsel %vm392_vm6, %v1717_v1, %v711_v42 }
 0x1ee   :  { %v744_v57 = vsel %vm392_vm6, %v642_v56, %v724_v15  ;;  %vm1913_vm2 = vmand %vm522_vm4, %vm526_vm10  ;;  %vm515_vm4 = vcmp.ge.s32.totalorder %v1342_v29, 2 }
 0x1ef   :  { %810 = vmatpush.msrb.mxu1 %v744_v57  ;;  %v1010_v30 = vpop.permute.xlu0 %1009  ;;  %v1929_v21 = vpop.permute.xlu1 %1044 }
 0x1f0   :  { %v1012_v20 = vunpack.i.h.bf16 %v1010_v30  ;;  %v1011_v47 = vunpack.i.l.bf16 %v1010_v30  ;;  %v1047_v44 = vunpack.i.h.bf16 %v1929_v21 }
 0x1f1   :  { %v570_v39 = vpop.permute.xlu2 %569  ;;  %811 = vmatpush.msrb.mxu1 %v740_v7 }
 0x1f2   :  { %v580_v41 = vsel %vm577_vm8, %v570_v39, %v1822_v31  ;;  %v635_v46 = vsel %vm632_vm1, %v1011_v47, %v1032_v60  ;;  %v633_v4 = vsel %vm632_vm1, %v1031_v59, %v1012_v20  ;;  %v636_v45 = vsel %vm632_vm1, %v1012_v20, %v1011_v47  ;;  %vm1947_vm1 = vmand %vm517_vm12, %vm529_vm5 }
 0x1f3   :  { %v641_v37 = vsel %vm1872_vm3, %v635_v46, 0.0  ;;  %v587_v43 = vsel %vm1887_vm13, %v580_v41, 0.0  ;;  %v643_v23 = vsel %vm1897_vm7, %v633_v4, 0.0  ;;  %v1042_v60 = vunpack.i.h.bf16 %v1841_v2  ;;  %vm1972_vm13 = vmand %vm515_vm4, %vm527_vm11 }
 0x1f4   :  { %v743_v50 = vsel %vm392_vm6, %v641_v37, %v723_v38  ;;  %v736_v11 = vsel %vm392_vm6, %v587_v43, %v700_v22  ;;  %v1041_v59 = vunpack.i.l.bf16 %v1841_v2  ;;  %v745_v48 = vsel %vm392_vm6, %v643_v23, %v725_v9 }
 0x1f5   :  { %790 = vmatpush.msrb.mxu0 %v743_v50  ;;  %812 = vmatpush.msrb.mxu1 %v736_v11  ;;  %v644_v24 = vsel %vm1913_vm2, %v636_v45, 0.0  ;;  %vm518_vm7 = vcmp.ge.s32.totalorder %v1270_v61, 2  ;;  %v741_v2 = vsel %vm392_vm6, %v1721_v51, %v713_v35  ;;  %vm560_vm5 = vcmp.lt.s32.totalorder %v1255_v52, 32  ;;  %v751_v11 = vld [vmem:[#allocation7] sm:$0xf] }
 0x1f6   :  { %830 = vmatpush.msrb.mxu2 %v745_v48  ;;  %v746_v25 = vsel %vm392_vm6, %v644_v24, %v726_v40  ;;  %v579_v51 = vsel %vm577_vm8, %v1822_v31, %v1041_v59  ;;  %v578_v56 = vsel %vm577_vm8, %v1041_v59, %v1042_v60  ;;  %vm1961_vm3 = vmand %vm518_vm7, %vm530_vm9  ;;  %v581_v22 = vsel %vm577_vm8, %v1042_v60, %v570_v39 }
 0x1f7   :  { %850 = vmatpush.msrb.mxu3 %v746_v25  ;;  %v1020_v26 = vpop.permute.xlu0 %1019  ;;  %791 = vmatpush.msrb.mxu0 %v739_v63  ;;  %vm2155_vm9 = vcmp.lt.s32.totalorder %v1255_v52, 2  ;;  %v588_v14 = vsel %vm1947_vm1, %v579_v51, 0.0  ;;  %v1046_v20 = vunpack.i.l.bf16 %v1929_v21  ;;  %v586_v49 = vsel %vm1972_vm13, %v581_v22, 0.0  ;;  %v534_v39 = vpop.permute.xlu1 %533  ;;  %vm2011_vm1 = vmand %vm518_vm7, %vm526_vm10  ;;  %v755_v63 = vld.sshfl [vmem:[#allocation1] sm:$0xff pattern:$0x75316420] }
 0x1f8   :  { %v1022_v6 = vunpack.i.h.bf16 %v1020_v26  ;;  %v1021_v15 = vunpack.i.l.bf16 %v1020_v26  ;;  %831 = vmatpush.msrb.mxu2 %v741_v2  ;;  %vm2156_vm2 = vmmov %vm2155_vm9  ;;  %v589_v47 = vsel %vm1961_vm3, %v578_v56, 0.0  ;;  %vm539_vm11 = vcmp.lt.s32.totalorder %v1255_v52, 34  ;;  %v756_v52 = vld.sshfl [vmem:[#allocation1 + $0x8] sm:$0xff pattern:$0x75316420] }
 0x1f9   :  { %851 = vmatpush.msrb.mxu3 %v742_v58  ;;  %vm2157_vm8 = vmmov %vm2156_vm2  ;;  %v540_v12 = vsel %vm539_vm11, %v1046_v20, %v1047_v44  ;;  %v563_v46 = vsel %vm560_vm5, %v997_v3, %v996_v5  ;;  %v541_v4 = vsel %vm539_vm11, %v534_v39, %v1046_v20  ;;  %v758_v2 = vld.sshfl [vmem:[#allocation1 + $0x18] sm:$0xff pattern:$0x75316420] }
 0x1fa   :  { %v602_v32 = vsel %vm2155_vm9, %v1022_v6, %v992_v8  ;;  %v600_v57 = vsel %vm2156_vm2, %v991_v34, %v1021_v15  ;;  %v599_v53 = vsel %vm2157_vm8, %v1021_v15, %v1022_v6  ;;  %vm546_vm3 = vmand %vm517_vm12, %vm525_vm14  ;;  %v551_v50 = vsel %vm2011_vm1, %v540_v12, 0.0  ;;  %v757_v15 = vld.sshfl [vmem:[#allocation1 + $0x10] sm:$0xff pattern:$0x75316420] }
 0x1fb   :  { %v603_v54 = vsel %vm523_vm0, %v602_v32, 0.0  ;;  %v605_v30 = vsel %vm525_vm14, %v600_v57, 0.0  ;;  %v606_v36 = vsel %vm526_vm10, %v599_v53, 0.0  ;;  %v550_v35 = vsel %vm546_vm3, %v541_v4, 0.0  ;;  %vm2039_vm14 = vmand %vm515_vm4, %vm523_vm0 }
 0x1fc   :  { %v699_v8 = vrot.slane %v603_v54, 4  ;;  %v701_v55 = vrot.slane %v605_v30, 4  ;;  %v702_v34 = vrot.slane %v606_v36, 4  ;;  %v566_v61 = vsel %vm516_vm15, %v563_v46, 0.0 }
 0x1fd   :  { %vm2162_vm10 = vcmp.ge.s32.totalorder %v1313_v17, 2  ;;  %vm2163_vm0 = vcmask 302080   ;;  %v688_v48 = vrot.slane %v566_v61, 4 }
 0x1fe   :  { %v735_v7 = vsel %vm392_vm6, %v586_v49, %v699_v8  ;;  %v737_v28 = vsel %vm392_vm6, %v588_v14, %v701_v55  ;;  %v738_v33 = vsel %vm392_vm6, %v589_v47, %v702_v34 }
 0x1ff   :  { %v1035_v38 = vpop.permute.xlu0 %1034  ;;  %792 = vmatpush.msrb.mxu0 %v735_v7  ;;  %832 = vmatpush.msrb.mxu2 %v737_v28 }
 0x200   :  { %v1037_v18 = vunpack.i.h.bf16 %v1035_v38  ;;  %v1036_v40 = vunpack.i.l.bf16 %v1035_v38  ;;  %852 = vmatpush.msrb.mxu3 %v738_v33 }
 0x202   :  { %v562_v0 = vsel %vm560_vm5, %v996_v5, %v1036_v40  ;;  %v561_v27 = vsel %vm560_vm5, %v1036_v40, %v1037_v18  ;;  %v564_v42 = vsel %vm560_vm5, %v1037_v18, %v997_v3 }
 0x203   :  { %v567_v37 = vsel %vm517_vm12, %v562_v0, 0.0  ;;  %v568_v43 = vsel %vm518_vm7, %v561_v27, 0.0  ;;  %v565_v19 = vsel %vm515_vm4, %v564_v42, 0.0  ;;  %vm545_vm12 = vmand %vm516_vm15, %vm2162_vm10 }
 0x204   :  { %v689_v9 = vrot.slane %v567_v37, 4  ;;  %v690_v10 = vrot.slane %v568_v43, 4  ;;  %vm2164_vm7 = vmmov %vm2163_vm0  ;;  %v687_v21 = vrot.slane %v565_v19, 4 }
 0x205   :  { %vm2165_vm15 = vmmov %vm2163_vm0 }
 0x206   :  { %v733_v45 = vsel %vm392_vm6, %v550_v35, %v689_v9  ;;  %v734_v60 = vsel %vm392_vm6, %v551_v50, %v690_v10  ;;  %vm2166_vm4 = vmmov %vm2163_vm0 }
 0x207   :  { %v532_v13 = vpop.permute.xlu0 %531  ;;  %833 = vmatpush.msrb.mxu2 %v733_v45  ;;  %853 = vmatpush.msrb.mxu3 %v734_v60 }
 0x208   :  { %v542_v59 = vsel %vm539_vm11, %v532_v13, %v534_v39  ;;  %v543_v29 = vsel %vm539_vm11, %v1047_v44, %v532_v13  ;;  %907 = vmatmul.msk.f32.vlgmr.msrb.gmra.mxu3 %vm2163_vm0, %v751_v11  ;;  %905 = vmatmul.msk.f32.vlgmr.msrb.gmra.mxu2 %vm2164_vm7, %v751_v11 }
 0x209   :  { %v548_v17 = vsel %vm2039_vm14, %v543_v29, 0.0  ;;  %v549_v16 = vsel %vm545_vm12, %v542_v59, 0.0 }
 0x20a   :  { %v731_v24 = vsel %vm392_vm6, %v548_v17, %v687_v21  ;;  %v732_v25 = vsel %vm392_vm6, %v549_v16, %v688_v48 }
 0x20b   :  { %793 = vmatpush.msrb.mxu0 %v731_v24  ;;  %813 = vmatpush.msrb.mxu1 %v732_v25 }
 0x20c   :  { %903 = vmatmul.msk.f32.vlgmr.msrb.gmra.mxu1 %vm2165_vm15, %v751_v11  ;;  %901 = vmatmul.msk.f32.vlgmr.msrb.gmra.mxu0 %vm2166_vm4, %v751_v11 }
 0x289   :  { %v815_v26 = vpop.f32.mrf.mxu1  ;;  %v795_v6 = vpop.f32.mrf.mxu0 }
 0x28a   :  { %v816_v58 = vadd.f32 %v815_v26, %v756_v52  ;;  %v796_v1 = vadd.f32 %v795_v6, %v755_v63 }
 0x28b   :  { %v855_v3 = vpop.f32.mrf.mxu3  ;;  %v835_v51 = vpop.f32.mrf.mxu2 }
 0x28c   :  { %v859_v56 = vmax.f32 %v816_v58, 0.0  ;;  %v856_v62 = vadd.f32 %v855_v3, %v758_v2  ;;  %v858_v22 = vmax.f32 %v796_v1, 0.0  ;;  %v836_v31 = vadd.f32 %v835_v51, %v757_v15 }
 0x28e   :  { %v866_v32 = vrot.slane %v859_v56, 4  ;;  %v861_v57 = vmax.f32 %v856_v62, 0.0  ;;  %v860_v53 = vmax.f32 %v836_v31, 0.0 }
 0x290   :  { %v867_v5 = vrot.slane %v861_v57, 4  ;;  %v868_v54 = vsel %vm392_vm6, %v858_v22, %v866_v32 }
 0x291   :  { %872 = vst [vmem:[#allocation8] sm:$0xff] %v868_v54 }
 0x292   :  { %v869_v30 = vsel %vm392_vm6, %v860_v53, %v867_v5 }
 0x293   :  { %873 = vst [vmem:[#allocation8 + $0x8] sm:$0xff] %v869_v30 }
 0x294   :  { %884 = dma.vmem_to_hbm [thread:$0]  %s880_s14, 256, %s882_s17, [#allocation4]  }
 0x295   :  { %1148 = dma.done.wait [#allocation4], 256  }
 0x296   :  { %1149 = vsyncadd [#allocation4], 4294967040 }
 0x297   :  { %889 = vsyncpa [#allocation3], 1 }
 0x298   :  { %890 = vsyncpa [#allocation6], 1 }
 0x299   :  { %891 = vsyncpa [#allocation4], 1 }

</bundles_post_ra>
